<compile_context>
chip_gen: v7x
topology: tpu7x:2x2x1
jax: 0.10.0
libtpu: 0.0.40
codegen_flags: <defaults>
</compile_context>

<pallas_src>
import functools
import math

import jax
import jax.numpy as jnp
from jax.experimental import pallas as pl
from jax.experimental.pallas import tpu as pltpu

LN_EPS = 1e-5


def _round_up(x, m):
    return ((x + m - 1) // m) * m


def _vmem_capacity_bytes():
    try:
        return int(pltpu.get_tpu_info().vmem_capacity_bytes)
    except Exception:
        return 64 * 1024 * 1024  # conservative: v7x per-TensorCore VMEM


def _ffn_kernel_resident(x_ref, w1_ref, b1_ref, w2_ref, b2_ref, g_ref, beta_ref,
                         o_ref, *, matmul_dtype):
    # Single F chunk: whole W1/W2 resident in VMEM, no accumulator needed.
    x_f32 = x_ref[...].astype(jnp.float32)
    h = jnp.dot(x_ref[...].astype(matmul_dtype), w1_ref[...],
                preferred_element_type=jnp.float32)
    h = jnp.maximum(h + b1_ref[...], 0.0)
    y = jnp.dot(h.astype(matmul_dtype), w2_ref[...],
                preferred_element_type=jnp.float32)
    # dropout: eval-mode identity.
    y = y + b2_ref[...] + x_f32
    mean = jnp.mean(y, axis=-1, keepdims=True)
    var = jnp.mean((y - mean) * (y - mean), axis=-1, keepdims=True)
    out = (y - mean) * jax.lax.rsqrt(var + LN_EPS) * g_ref[...] + beta_ref[...]
    o_ref[...] = out.astype(o_ref.dtype)


def _ffn_kernel_chunked(x_ref, w1_ref, b1_ref, w2_ref, b2_ref, g_ref, beta_ref,
                        o_ref, acc_ref, *, matmul_dtype):
    # F (hidden) dim is tiled on the inner, "arbitrary" grid axis; f32 scratch
    # accumulator carries the partial second matmul across F chunks.
    j = pl.program_id(1)

    @pl.when(j == 0)
    def _init():
        acc_ref[...] = jnp.zeros_like(acc_ref)

    h = jnp.dot(x_ref[...].astype(matmul_dtype), w1_ref[...],
                preferred_element_type=jnp.float32)
    h = jnp.maximum(h + b1_ref[...], 0.0)
    acc_ref[...] += jnp.dot(h.astype(matmul_dtype), w2_ref[...],
                            preferred_element_type=jnp.float32)

    @pl.when(j == pl.num_programs(1) - 1)
    def _finalize():
        # dropout (eval mode => identity), residual add and LayerNorm in f32.
        y = acc_ref[...] + b2_ref[...] + x_ref[...].astype(jnp.float32)
        mean = jnp.mean(y, axis=-1, keepdims=True)
        var = jnp.mean((y - mean) * (y - mean), axis=-1, keepdims=True)
        out = (y - mean) * jax.lax.rsqrt(var + LN_EPS) * g_ref[...] + beta_ref[...]
        o_ref[...] = out.astype(o_ref.dtype)


def make_positional_wise_ffn(w1, b1, w2, b2, gamma, beta, *,
                             matmul_dtype=jnp.bfloat16,
                             tm=512,
                             vmem_budget_bytes=None):
    """One-time setup (weight cast + F-padding + tiling plan); returns fn(x).

    w1: (D, F), b1: (F,), w2: (F, D), b2/gamma/beta: (D,).  x: (..., D).
    """
    D, F = w1.shape
    assert w2.shape == (F, D)

    phys_vmem = _vmem_capacity_bytes()
    budget = (int(vmem_budget_bytes) if vmem_budget_bytes is not None
              else int(0.80 * phys_vmem))
    hard_cap = int(0.85 * phys_vmem)

    w_it = jnp.dtype(matmul_dtype).itemsize
    F128 = _round_up(F, 128)

    def _vmem_estimate(tm_e, tf_e, weight_bufs, with_acc):
        weights = weight_bufs * 2 * D * tf_e * w_it          # W1 + W2 chunks
        io = 2 * 2 * tm_e * D * 4                            # x in + out, double-buffered
        acc = (tm_e * D * 4) if with_acc else 0              # f32 accumulator scratch
        hidden = tm_e * tf_e * (4 + w_it)                    # f32 h + matmul-dtype cast copy
        biases = 2 * (tf_e + 3 * D) * 4
        return weights + io + acc + hidden + biases

    # Prefer fully VMEM-resident weights (single F chunk, loaded exactly once).
    if _vmem_estimate(tm, F128, 1, False) <= budget:
        tf_eff = F128
    else:
        tf_eff = F128
        while tf_eff > 128 and _vmem_estimate(tm, tf_eff, 2, True) > budget:
            tf_eff = max(128, _round_up(tf_eff // 2, 128))

    F_pad = _round_up(F, tf_eff)
    nf = F_pad // tf_eff
    resident = (nf == 1)

    # One-time parameter prep (F-padding + cast), hoisted out of the per-call
    # jitted path.  Zero-padded hidden units contribute relu(0)=0 through zero
    # rows of W2, so the result is exact.
    pf = F_pad - F
    w1p = jnp.pad(jnp.asarray(w1, matmul_dtype), ((0, 0), (0, pf)))
    w2p = jnp.pad(jnp.asarray(w2, matmul_dtype), ((0, pf), (0, 0)))
    b1p = jnp.pad(jnp.asarray(b1, jnp.float32), ((0, pf),)).reshape(1, F_pad)
    b2p = jnp.asarray(b2, jnp.float32).reshape(1, D)
    gp = jnp.asarray(gamma, jnp.float32).reshape(1, D)
    bp = jnp.asarray(beta, jnp.float32).reshape(1, D)

    @jax.jit
    def _apply(x, w1p, b1p, w2p, b2p, gp, bp):
        assert x.shape[-1] == D, "last dim of x must equal model_dim"
        rows = math.prod(x.shape[:-1])
        x2d = x.reshape(rows, D)

        tm_eff = min(tm, _round_up(rows, 8))
        # Keep >= 2 row tiles when there is enough work (v7x has 2 TCs/chip).
        if rows > 256 and rows <= tm_eff:
            tm_eff = _round_up((rows + 1) // 2, 8)
        rows_pad = _round_up(rows, tm_eff)
        if rows_pad != rows:
            x2d = jnp.pad(x2d, ((0, rows_pad - rows), (0, 0)))
        n_row_tiles = rows_pad // tm_eff

        x_it = x2d.dtype.itemsize
        w_stream_factor = 1 if resident else n_row_tiles
        cost = pl.CostEstimate(
            flops=4 * rows_pad * D * F_pad,                   # two matmuls
            transcendentals=rows_pad,                         # rsqrt per row
            bytes_accessed=(2 * rows_pad * D * x_it
                            + w_stream_factor * 2 * D * F_pad * w_it),
        )
        est = _vmem_estimate(tm_eff, tf_eff, 1 if resident else 2, not resident)
        vmem_limit = min(max(int(est * 1.4), 32 * 1024 * 1024), hard_cap)

        if resident:
            kernel = functools.partial(_ffn_kernel_resident,
                                       matmul_dtype=matmul_dtype)
            grid = (n_row_tiles,)
            in_specs = [
                pl.BlockSpec((tm_eff, D), lambda i: (i, 0)),               # x rows
                pl.BlockSpec((D, tf_eff), lambda i: (0, 0),                # W1 (resident)
                             pipeline_mode=pl.Buffered(1)),
                pl.BlockSpec((1, tf_eff), lambda i: (0, 0),                # b1
                             pipeline_mode=pl.Buffered(1)),
                pl.BlockSpec((tf_eff, D), lambda i: (0, 0),                # W2 (resident)
                             pipeline_mode=pl.Buffered(1)),
                pl.BlockSpec((1, D), lambda i: (0, 0)),                    # b2
                pl.BlockSpec((1, D), lambda i: (0, 0)),                    # gamma
                pl.BlockSpec((1, D), lambda i: (0, 0)),                    # beta
            ]
            out_spec = pl.BlockSpec((tm_eff, D), lambda i: (i, 0))
            scratch = []
            dims = ("parallel",)
        else:
            kernel = functools.partial(_ffn_kernel_chunked,
                                       matmul_dtype=matmul_dtype)
            grid = (n_row_tiles, nf)
            in_specs = [
                pl.BlockSpec((tm_eff, D), lambda i, j: (i, 0)),            # x rows
                pl.BlockSpec((D, tf_eff), lambda i, j: (0, j)),            # W1 F-chunk
                pl.BlockSpec((1, tf_eff), lambda i, j: (0, j)),            # b1 F-chunk
                pl.BlockSpec((tf_eff, D), lambda i, j: (j, 0)),            # W2 F-chunk
                pl.BlockSpec((1, D), lambda i, j: (0, 0)),                 # b2
                pl.BlockSpec((1, D), lambda i, j: (0, 0)),                 # gamma
                pl.BlockSpec((1, D), lambda i, j: (0, 0)),                 # beta
            ]
            out_spec = pl.BlockSpec((tm_eff, D), lambda i, j: (i, 0))
            scratch = [pltpu.VMEM((tm_eff, D), jnp.float32)]
            dims = ("parallel", "arbitrary")

        out2d = pl.pallas_call(
            kernel,
            out_shape=jax.ShapeDtypeStruct((rows_pad, D), x.dtype),
            grid_spec=pltpu.PrefetchScalarGridSpec(
                num_scalar_prefetch=0,
                grid=grid,
                in_specs=in_specs,
                out_specs=out_spec,
                scratch_shapes=scratch,
            ),
            compiler_params=pltpu.CompilerParams(
                dimension_semantics=dims,
                vmem_limit_bytes=vmem_limit,
            ),
            cost_estimate=cost,
        )(x2d, w1p, b1p, w2p, b2p, gp, bp)

        return out2d[:rows].reshape(x.shape)

    return lambda x: _apply(x, w1p, b1p, w2p, b2p, gp, bp)


def _reference(x, w1, b1, w2, b2, gamma, beta):
    h = jnp.maximum(x @ w1 + b1, 0.0)
    y = h @ w2 + b2
    y = y + x
    mean = jnp.mean(y, axis=-1, keepdims=True)
    var = jnp.mean((y - mean) ** 2, axis=-1, keepdims=True)
    return (y - mean) / jnp.sqrt(var + LN_EPS) * gamma + beta


def _make_params(key, D, F):
    k1, kb1, k2, kb2 = jax.random.split(key, 4)
    lim1 = 1.0 / (D ** 0.5)
    lim2 = 1.0 / (F ** 0.5)
    w1 = jax.random.uniform(k1, (D, F), jnp.float32, -lim1, lim1)
    b1 = jax.random.uniform(kb1, (F,), jnp.float32, -lim1, lim1)
    w2 = jax.random.uniform(k2, (F, D), jnp.float32, -lim2, lim2)
    b2 = jax.random.uniform(kb2, (D,), jnp.float32, -lim2, lim2)
    gamma = jnp.ones((D,), jnp.float32)
    beta = jnp.zeros((D,), jnp.float32)
    return w1, b1, w2, b2, gamma, beta


if __name__ == "__main__":
    key = jax.random.PRNGKey(0)
    kx1, kp1, kx2, kp2 = jax.random.split(key, 4)

    # Case 1: exact f32 MXU path, weights fully VMEM-resident (fused kernel).
    B, S, D, F = 2, 16, 128, 256
    x = jax.random.normal(kx1, (B, S, D), dtype=jnp.float32)
    params = _make_params(kp1, D, F)
    ref = _reference(x, *params)

    ffn_f32 = make_positional_wise_ffn(*params, matmul_dtype=jnp.float32)
    out = jax.block_until_ready(ffn_f32(x))
    assert out.shape == (B, S, D)
    assert jnp.allclose(out, ref, atol=1e-4, rtol=1e-4), "mismatch (f32 resident)"

    # Case 2: default bf16 MXU operands (native MXU peak); relaxed tolerance
    # since the reference is full f32.
    ffn_bf16 = make_positional_wise_ffn(*params)
    out_bf = jax.block_until_ready(ffn_bf16(x))
    assert out_bf.shape == (B, S, D)
    assert jnp.allclose(out_bf, ref, atol=5e-2, rtol=5e-2), "mismatch (bf16 resident)"

    # Case 3: ragged rows, non-128-multiple F, artificially small VMEM budget
    # to force the streamed / chunked-accumulator path.
    B2, S2, D2, F2 = 3, 5, 128, 200
    x2 = jax.random.normal(kx2, (B2, S2, D2), dtype=jnp.float32)
    params2 = _make_params(kp2, D2, F2)
    ffn_chunked = make_positional_wise_ffn(*params2, matmul_dtype=jnp.float32,
                                           vmem_budget_bytes=1 << 20)
    out2 = jax.block_until_ready(ffn_chunked(x2))
    ref2 = _reference(x2, *params2)
    assert out2.shape == (B2, S2, D2)
    assert jnp.allclose(out2, ref2, atol=1e-4, rtol=1e-4), "mismatch (chunked)"

    print("KERNEL_OK")
</pallas_src>

<mosaic_0001>
module attributes {stable_mosaic.version = 11 : i64} {
  func.func @_ffn_kernel_resident(%arg0: i32, %arg1: memref<32x128xf32, #tpu.memory_space<vmem>>, %arg2: memref<128x256xf32, #tpu.memory_space<vmem>>, %arg3: memref<1x256xf32, #tpu.memory_space<vmem>>, %arg4: memref<256x128xf32, #tpu.memory_space<vmem>>, %arg5: memref<1x128xf32, #tpu.memory_space<vmem>>, %arg6: memref<1x128xf32, #tpu.memory_space<vmem>>, %arg7: memref<1x128xf32, #tpu.memory_space<vmem>>, %arg8: memref<32x128xf32, #tpu.memory_space<vmem>>) attributes {dimension_semantics = [#tpu.dimension_semantics<parallel>], iteration_bounds = array<i64: 1>, scalar_prefetch = 0 : i64, scratch_operands = 0 : i64, tpu.core_type = #tpu.core_type<tc>, window_params = [{transform_indices = @transform_0, window_bounds = array<i64: 32, 128>}, {pipeline_mode = #tpu.pipeline_mode<synchronous>, transform_indices = @transform_1, window_bounds = array<i64: 128, 256>}, {pipeline_mode = #tpu.pipeline_mode<synchronous>, transform_indices = @transform_2, window_bounds = array<i64: 1, 256>}, {pipeline_mode = #tpu.pipeline_mode<synchronous>, transform_indices = @transform_3, window_bounds = array<i64: 256, 128>}, {pipeline_mode = #tpu.pipeline_mode<synchronous>, transform_indices = @transform_4, window_bounds = array<i64: 1, 128>}, {pipeline_mode = #tpu.pipeline_mode<synchronous>, transform_indices = @transform_5, window_bounds = array<i64: 1, 128>}, {pipeline_mode = #tpu.pipeline_mode<synchronous>, transform_indices = @transform_6, window_bounds = array<i64: 1, 128>}, {transform_indices = @transform_7, window_bounds = array<i64: 32, 128>}]} {
    %c0 = arith.constant 0 : index
    %c0_0 = arith.constant 0 : index
    %0 = vector.load %arg1[%c0, %c0_0] : memref<32x128xf32, #tpu.memory_space<vmem>>, vector<32x128xf32>
    %c0_1 = arith.constant 0 : index
    %c0_2 = arith.constant 0 : index
    %1 = vector.load %arg1[%c0_1, %c0_2] : memref<32x128xf32, #tpu.memory_space<vmem>>, vector<32x128xf32>
    %c0_3 = arith.constant 0 : index
    %c0_4 = arith.constant 0 : index
    %2 = vector.load %arg2[%c0_3, %c0_4] : memref<128x256xf32, #tpu.memory_space<vmem>>, vector<128x256xf32>
    %cst = arith.constant dense<0.000000e+00> : vector<32x256xf32>
    %3 = tpu.matmul %1, %2, %cst {dimension_numbers = #tpu.dot_dimension_numbers<[1], [0], [0], [1], [0, 0, 1, 1], [], []>} : vector<32x128xf32>, vector<128x256xf32>, vector<32x256xf32> -> vector<32x256xf32>
    %c0_5 = arith.constant 0 : index
    %c0_6 = arith.constant 0 : index
    %4 = vector.load %arg3[%c0_5, %c0_6] : memref<1x256xf32, #tpu.memory_space<vmem>>, vector<1x256xf32>
    %5 = vector.broadcast %4 : vector<1x256xf32> to vector<32x256xf32>
    %6 = arith.addf %3, %5 : vector<32x256xf32>
    %cst_7 = arith.constant 0.000000e+00 : f32
    %7 = vector.broadcast %cst_7 : f32 to vector<32x256xf32>
    %8 = arith.maximumf %6, %7 : vector<32x256xf32>
    %c0_8 = arith.constant 0 : index
    %c0_9 = arith.constant 0 : index
    %9 = vector.load %arg4[%c0_8, %c0_9] : memref<256x128xf32, #tpu.memory_space<vmem>>, vector<256x128xf32>
    %cst_10 = arith.constant dense<0.000000e+00> : vector<32x128xf32>
    %10 = tpu.matmul %8, %9, %cst_10 {dimension_numbers = #tpu.dot_dimension_numbers<[1], [0], [0], [1], [0, 0, 1, 1], [], []>} : vector<32x256xf32>, vector<256x128xf32>, vector<32x128xf32> -> vector<32x128xf32>
    %c0_11 = arith.constant 0 : index
    %c0_12 = arith.constant 0 : index
    %11 = vector.load %arg5[%c0_11, %c0_12] : memref<1x128xf32, #tpu.memory_space<vmem>>, vector<1x128xf32>
    %12 = vector.broadcast %11 : vector<1x128xf32> to vector<32x128xf32>
    %13 = arith.addf %10, %12 : vector<32x128xf32>
    %14 = arith.addf %13, %0 : vector<32x128xf32>
    %cst_13 = arith.constant dense<0.000000e+00> : vector<32xf32>
    %15 = vector.multi_reduction <add>, %14, %cst_13 [1] : vector<32x128xf32> to vector<32xf32>
    %16 = vector.shape_cast %15 : vector<32xf32> to vector<32x1xf32>
    %cst_14 = arith.constant 1.280000e+02 : f32
    %17 = vector.broadcast %cst_14 : f32 to vector<32x1xf32>
    %18 = arith.divf %16, %17 : vector<32x1xf32>
    %19 = vector.broadcast %18 : vector<32x1xf32> to vector<32x128xf32>
    %20 = arith.subf %14, %19 : vector<32x128xf32>
    %21 = vector.broadcast %18 : vector<32x1xf32> to vector<32x128xf32>
    %22 = arith.subf %14, %21 : vector<32x128xf32>
    %23 = arith.mulf %20, %22 : vector<32x128xf32>
    %cst_15 = arith.constant dense<0.000000e+00> : vector<32xf32>
    %24 = vector.multi_reduction <add>, %23, %cst_15 [1] : vector<32x128xf32> to vector<32xf32>
    %25 = vector.shape_cast %24 : vector<32xf32> to vector<32x1xf32>
    %cst_16 = arith.constant 1.280000e+02 : f32
    %26 = vector.broadcast %cst_16 : f32 to vector<32x1xf32>
    %27 = arith.divf %25, %26 : vector<32x1xf32>
    %28 = vector.broadcast %18 : vector<32x1xf32> to vector<32x128xf32>
    %29 = arith.subf %14, %28 : vector<32x128xf32>
    %cst_17 = arith.constant 9.99999974E-6 : f32
    %30 = vector.broadcast %cst_17 : f32 to vector<32x1xf32>
    %31 = arith.addf %27, %30 : vector<32x1xf32>
    %32 = math.rsqrt %31 : vector<32x1xf32>
    %33 = vector.broadcast %32 : vector<32x1xf32> to vector<32x128xf32>
    %34 = arith.mulf %29, %33 : vector<32x128xf32>
    %c0_18 = arith.constant 0 : index
    %c0_19 = arith.constant 0 : index
    %35 = vector.load %arg6[%c0_18, %c0_19] : memref<1x128xf32, #tpu.memory_space<vmem>>, vector<1x128xf32>
    %36 = vector.broadcast %35 : vector<1x128xf32> to vector<32x128xf32>
    %37 = arith.mulf %34, %36 : vector<32x128xf32>
    %c0_20 = arith.constant 0 : index
    %c0_21 = arith.constant 0 : index
    %38 = vector.load %arg7[%c0_20, %c0_21] : memref<1x128xf32, #tpu.memory_space<vmem>>, vector<1x128xf32>
    %39 = vector.broadcast %38 : vector<1x128xf32> to vector<32x128xf32>
    %40 = arith.addf %37, %39 : vector<32x128xf32>
    %c0_22 = arith.constant 0 : index
    %c0_23 = arith.constant 0 : index
    %41 = vector.load %arg8[%c0_22, %c0_23] : memref<32x128xf32, #tpu.memory_space<vmem>>, vector<32x128xf32>
    tpu.vector_store %arg8[%c0_22, %c0_23], %40 {strides = array<i32>} : memref<32x128xf32, #tpu.memory_space<vmem>>, vector<32x128xf32>,
    return
  }
  func.func @transform_0(%arg0: i32) -> (i32, i32) {
    %c0_i32 = arith.constant 0 : i32
    %c0_i32_0 = arith.constant 0 : i32
    return %arg0, %c0_i32 : i32, i32
  }
  func.func @transform_1(%arg0: i32) -> (i32, i32) {
    %c0_i32 = arith.constant 0 : i32
    %c0_i32_0 = arith.constant 0 : i32
    %c0_i32_1 = arith.constant 0 : i32
    return %c0_i32, %c0_i32_0 : i32, i32
  }
  func.func @transform_2(%arg0: i32) -> (i32, i32) {
    %c0_i32 = arith.constant 0 : i32
    %c0_i32_0 = arith.constant 0 : i32
    %c0_i32_1 = arith.constant 0 : i32
    return %c0_i32, %c0_i32_0 : i32, i32
  }
  func.func @transform_3(%arg0: i32) -> (i32, i32) {
    %c0_i32 = arith.constant 0 : i32
    %c0_i32_0 = arith.constant 0 : i32
    %c0_i32_1 = arith.constant 0 : i32
    return %c0_i32, %c0_i32_0 : i32, i32
  }
  func.func @transform_4(%arg0: i32) -> (i32, i32) {
    %c0_i32 = arith.constant 0 : i32
    %c0_i32_0 = arith.constant 0 : i32
    %c0_i32_1 = arith.constant 0 : i32
    return %c0_i32, %c0_i32_0 : i32, i32
  }
  func.func @transform_5(%arg0: i32) -> (i32, i32) {
    %c0_i32 = arith.constant 0 : i32
    %c0_i32_0 = arith.constant 0 : i32
    %c0_i32_1 = arith.constant 0 : i32
    return %c0_i32, %c0_i32_0 : i32, i32
  }
  func.func @transform_6(%arg0: i32) -> (i32, i32) {
    %c0_i32 = arith.constant 0 : i32
    %c0_i32_0 = arith.constant 0 : i32
    %c0_i32_1 = arith.constant 0 : i32
    return %c0_i32, %c0_i32_0 : i32, i32
  }
  func.func @transform_7(%arg0: i32) -> (i32, i32) {
    %c0_i32 = arith.constant 0 : i32
    %c0_i32_0 = arith.constant 0 : i32
    return %arg0, %c0_i32 : i32, i32
  }
}

</mosaic_0001>

<bundles_post_ra>
// kernel: _apply.1
= control target key start
LH: loop header
LB: loop body
LE: loop exit
PB: predicated region body
PF: predicated region fallthrough
CT: control target
= control target key end

     0   :  { %12 = vsyncpa [#allocation3], 0  ;;  %s790_s0 = inlined_call_operand.hbm [shape: f32[32,128], index: 0, kind: input, shape index: {}]   ;;  %s791_s1 = inlined_call_operand.hbm [shape: f32[128,256], index: 1, kind: input, shape index: {}]   ;;  %s792_s2 = inlined_call_operand.vmem [shape: f32[1,256], index: 2, kind: input, shape index: {}]   ;;  %s793_s3 = inlined_call_operand.hbm [shape: f32[256,128], index: 3, kind: input, shape index: {}]   ;;  %s794_s4 = inlined_call_operand.vmem [shape: f32[1,128], index: 4, kind: input, shape index: {}]   ;;  %s795_s5 = inlined_call_operand.vmem [shape: f32[1,128], index: 5, kind: input, shape index: {}]   ;;  %s796_s6 = inlined_call_operand.vmem [shape: f32[1,128], index: 6, kind: input, shape index: {}]   ;;  %s797_s7 = inlined_call_operand.hbm [shape: f32[32,128], index: 7, kind: output, shape index: {}]  }
   0x1   :  { %13 = vsyncpa [#allocation6], 0 }
   0x2   :  { %14 = vsyncpa [#allocation4], 0  ;;  %s652_s24 = smov [#allocation5]   ;;  %s558_s28 = scalar_lea.hbm %s791_s1, 4096 }
   0x3   :  { %s32_s25 = sshll.u32 %s652_s24, 4  ;;  %p559_p0 = scmp.ne.s32.totalorder %s791_s1, %s558_s28  ;;  %s33_s25 = int_to_ptr.vmem [resolvable:$true] %s32_s25 }
   0x4   :  { %p562_p1 = scmp.lt.u32.totalorder %s558_s28, %s791_s1 }
   0x6   :  { %p564_p2 = pnand %p562_p1, %p559_p0 }
   0x8   :  { %567 = shalt.err (!%p564_p2)
}
   0x9   :  { %s568_s10 = scalar_lea.vmem %s33_s25, 4096  ;;  %p573_p4 = scmp.lt.s32.totalorder %s33_s25, %s33_s25 }
   0xa   :  { %p569_p3 = scmp.ne.s32.totalorder %s33_s25, %s568_s10  ;;  %p574_p5 = scmp.lt.s32.totalorder %s568_s10, %s568_s10 }
   0xc   :  { %p575_p6 = por %p574_p5, %p573_p4 }
   0xe   :  { %p576_p7 = pnand %p575_p6, %p569_p3 }
  0x10   :  { %579 = shalt.err (!%p576_p7)
}
  0x11   :  { %s653_s11 = smov 256   ;;  %s654_s12 = smov 16  }
  0x12   :  { %38 = dma.hbm_to_vmem [thread:$0]  %s791_s1, 4096, %s33_s25, [#allocation6], %s653_s11, %s653_s11, %s654_s12  }
  0x13   :  { %s655_s15 = smov [#allocation2]   ;;  %s580_s19 = scalar_lea.hbm %s790_s0, 512 }
  0x14   :  { %s20_s16 = sshll.u32 %s655_s15, 4  ;;  %p581_p8 = scmp.ne.s32.totalorder %s790_s0, %s580_s19  ;;  %s21_s16 = int_to_ptr.vmem [resolvable:$true] %s20_s16 }
  0x15   :  { %p584_p9 = scmp.lt.u32.totalorder %s580_s19, %s790_s0 }
  0x17   :  { %p586_p10 = pnand %p584_p9, %p581_p8 }
  0x19   :  { %589 = shalt.err (!%p586_p10)
}
  0x1a   :  { %s590_s24 = scalar_lea.vmem %s21_s16, 512  ;;  %p595_p12 = scmp.lt.s32.totalorder %s21_s16, %s21_s16 }
  0x1b   :  { %p591_p11 = scmp.ne.s32.totalorder %s21_s16, %s590_s24  ;;  %p596_p13 = scmp.lt.s32.totalorder %s590_s24, %s590_s24 }
  0x1d   :  { %p597_p0 = por %p596_p13, %p595_p12 }
  0x1f   :  { %p598_p1 = pnand %p597_p0, %p591_p11 }
  0x21   :  { %601 = shalt.err (!%p598_p1)
}
  0x22   :  { %s656_s1 = smov 128   ;;  %s657_s25 = smov 8  }
  0x23   :  { %26 = dma.hbm_to_vmem [thread:$0]  %s790_s0, 512, %s21_s16, [#allocation3], %s656_s1, %s656_s1, %s657_s25  }
  0x24   :  { %s658_s28 = smov [#allocation7]   ;;  %s602_s9 = scalar_lea.hbm %s793_s3, 4096 }
  0x25   :  { %s46_s29 = sshll.u32 %s658_s28, 4  ;;  %p603_p2 = scmp.ne.s32.totalorder %s793_s3, %s602_s9  ;;  %s47_s29 = int_to_ptr.vmem [resolvable:$true] %s46_s29 }
  0x26   :  { %p606_p3 = scmp.lt.u32.totalorder %s602_s9, %s793_s3 }
  0x28   :  { %p608_p4 = pnand %p606_p3, %p603_p2 }
  0x2a   :  { %611 = shalt.err (!%p608_p4)
}
  0x2b   :  { %s612_s14 = scalar_lea.vmem %s47_s29, 4096  ;;  %p617_p6 = scmp.lt.s32.totalorder %s47_s29, %s47_s29 }
  0x2c   :  { %p613_p5 = scmp.ne.s32.totalorder %s47_s29, %s612_s14  ;;  %p618_p7 = scmp.lt.s32.totalorder %s612_s14, %s612_s14 }
  0x2e   :  { %p619_p8 = por %p618_p7, %p617_p6 }
  0x30   :  { %p620_p9 = pnand %p619_p8, %p613_p5 }
  0x32   :  { %623 = shalt.err (!%p620_p9)
}
  0x33   :  { %52 = dma.hbm_to_vmem [thread:$0]  %s793_s3, 4096, %s47_s29, [#allocation6], %s656_s1, %s656_s1, %s657_s25  }
  0x34   :  { %646 = dma.done.wait [#allocation3], 512  }
  0x35   :  { %647 = vsyncadd [#allocation3], 4294966784 }
  0x36   :  { %648 = dma.done.wait [#allocation6], 8192  }
  0x37   :  { %649 = vsyncadd [#allocation6], 4294959104  ;;  %v659_v0 = vmov 0.0   ;;  %v73_v1 = vld [vmem:[#allocation5 + $0x8] sm:$0xff]  ;;  %v75_v2 = vld [vmem:[#allocation5 + $0x18] sm:$0xff] }
  0x38   :  { %180 = vmatprep.mubr.f32.mxu0 %v659_v0  ;;  %v72_v3 = vld [vmem:[#allocation5] sm:$0xff]  ;;  %v477_v4 = vpack.c.bf16 %v75_v2, %v73_v1  ;;  %v74_v5 = vld [vmem:[#allocation5 + $0x10] sm:$0xff]  ;;  %v77_v6 = vld [vmem:[#allocation5 + $0x28] sm:$0xff] }
  0x39   :  { %v79_v7 = vld [vmem:[#allocation5 + $0x38] sm:$0xff]  ;;  %v479_v8 = vpack.c.bf16 %v74_v5, %v72_v3  ;;  %v76_v10 = vld [vmem:[#allocation5 + $0x20] sm:$0xff]  ;;  %v78_v11 = vld [vmem:[#allocation5 + $0x30] sm:$0xff] }
  0x3a   :  { %v481_v9 = vpack.c.bf16 %v79_v7, %v77_v6  ;;  %v81_v12 = vld [vmem:[#allocation5 + $0x48] sm:$0xff]  ;;  %478 = vmatprep.subr.bf16.mxu0 %v477_v4  ;;  %v83_v13 = vld [vmem:[#allocation5 + $0x58] sm:$0xff]  ;;  %v483_v14 = vpack.c.bf16 %v78_v11, %v76_v10  ;;  %v80_v16 = vld [vmem:[#allocation5 + $0x40] sm:$0xff] }
  0x3b   :  { %480 = vmatpush1.bf16.msra.mxu0 %v479_v8  ;;  %v485_v15 = vpack.c.bf16 %v83_v13, %v81_v12  ;;  %v82_v17 = vld [vmem:[#allocation5 + $0x50] sm:$0xff]  ;;  %v85_v18 = vld [vmem:[#allocation5 + $0x68] sm:$0xff]  ;;  %v87_v19 = vld [vmem:[#allocation5 + $0x78] sm:$0xff] }
  0x3c   :  { %482 = vmatprep.subr.bf16.mxu0 %v481_v9  ;;  %v487_v20 = vpack.c.bf16 %v82_v17, %v80_v16  ;;  %v489_v21 = vpack.c.bf16 %v87_v19, %v85_v18  ;;  %v84_v22 = vld [vmem:[#allocation5 + $0x60] sm:$0xff]  ;;  %v86_v23 = vld [vmem:[#allocation5 + $0x70] sm:$0xff]  ;;  %v89_v24 = vld [vmem:[#allocation5 + $0x88] sm:$0xff] }
  0x3d   :  { %v91_v25 = vld [vmem:[#allocation5 + $0x98] sm:$0xff]  ;;  %v88_v26 = vld [vmem:[#allocation5 + $0x80] sm:$0xff]  ;;  %v90_v27 = vld [vmem:[#allocation5 + $0x90] sm:$0xff]  ;;  %v491_v28 = vpack.c.bf16 %v86_v23, %v84_v22 }
  0x3e   :  { %v93_v29 = vld [vmem:[#allocation5 + $0xa8] sm:$0xff]  ;;  %v95_v30 = vld [vmem:[#allocation5 + $0xb8] sm:$0xff]  ;;  %v229_v31 = vld [vmem:[#allocation7 + $0x80] sm:$0xff]  ;;  %v493_v34 = vpack.c.bf16 %v91_v25, %v89_v24  ;;  %v495_v45 = vpack.c.bf16 %v90_v27, %v88_v26 }
  0x3f   :  { %484 = vmatpush1.bf16.msra.mxu0 %v483_v14  ;;  %v230_v32 = vld [vmem:[#allocation7 + $0x88] sm:$0xff]  ;;  %v213_v33 = vld [vmem:[#allocation7] sm:$0xff]  ;;  %v231_v37 = vld [vmem:[#allocation7 + $0x90] sm:$0xff]  ;;  %v497_v49 = vpack.c.bf16 %v95_v30, %v93_v29 }
  0x40   :  { %486 = vmatprep.subr.bf16.mxu0 %v485_v15  ;;  %v509_v35 = vpack.c.bf16 %v230_v32, %v229_v31  ;;  %v214_v36 = vld [vmem:[#allocation7 + $0x8] sm:$0xff]  ;;  %v232_v38 = vld [vmem:[#allocation7 + $0x98] sm:$0xff]  ;;  %v215_v41 = vld [vmem:[#allocation7 + $0x10] sm:$0xff] }
  0x41   :  { %v511_v39 = vpack.c.bf16 %v214_v36, %v213_v33  ;;  %v513_v40 = vpack.c.bf16 %v232_v38, %v231_v37  ;;  %v216_v42 = vld [vmem:[#allocation7 + $0x18] sm:$0xff]  ;;  %v233_v43 = vld [vmem:[#allocation7 + $0xa0] sm:$0xff]  ;;  %v234_v44 = vld [vmem:[#allocation7 + $0xa8] sm:$0xff]  ;;  %v106_v38 = vlaneseq }
  0x42   :  { %510 = vmatprep.subr.bf16.mxu1 %v509_v35  ;;  %v92_v46 = vld [vmem:[#allocation5 + $0xa0] sm:$0xff]  ;;  %v94_v47 = vld [vmem:[#allocation5 + $0xb0] sm:$0xff]  ;;  %v515_v48 = vpack.c.bf16 %v216_v42, %v215_v41  ;;  %v97_v50 = vld [vmem:[#allocation5 + $0xc8] sm:$0xff]  ;;  %v517_v51 = vpack.c.bf16 %v234_v44, %v233_v43 }
  0x43   :  { %488 = vmatpush1.bf16.msra.mxu0 %v487_v20  ;;  %512 = vmatpush3.bf16.msra.mxu1 %v511_v39  ;;  %v217_v52 = vld [vmem:[#allocation7 + $0x20] sm:$0xff]  ;;  %v218_v53 = vld [vmem:[#allocation7 + $0x28] sm:$0xff]  ;;  %v99_v54 = vld [vmem:[#allocation5 + $0xd8] sm:$0xff]  ;;  %v499_v57 = vpack.c.bf16 %v94_v47, %v92_v46  ;;  %v107_v39 = vshrl.u32 %v106_v38, 7 }
  0x44   :  { %490 = vmatprep.subr.bf16.mxu0 %v489_v21  ;;  %514 = vmatprep.subr.bf16.mxu1 %v513_v40  ;;  %v235_v55 = vld [vmem:[#allocation7 + $0xb0] sm:$0xff]  ;;  %v236_v56 = vld [vmem:[#allocation7 + $0xb8] sm:$0xff]  ;;  %v96_v58 = vld [vmem:[#allocation5 + $0xc0] sm:$0xff]  ;;  %v519_v60 = vpack.c.bf16 %v218_v53, %v217_v52  ;;  %v501_v61 = vpack.c.bf16 %v99_v54, %v97_v50 }
  0x45   :  { %v98_v59 = vld [vmem:[#allocation5 + $0xd0] sm:$0xff]  ;;  %v101_v62 = vld [vmem:[#allocation5 + $0xe8] sm:$0xff]  ;;  %v521_v63 = vpack.c.bf16 %v236_v56, %v235_v55  ;;  %v220_v2 = vld [vmem:[#allocation7 + $0x38] sm:$0xff]  ;;  %v108_v40 = vsub.s32 0, %v107_v39  ;;  %v112_v41 = vsub.s32 1, %v107_v39 }
  0x46   :  { %v219_v1 = vld [vmem:[#allocation7 + $0x30] sm:$0xff]  ;;  %v103_v3 = vld [vmem:[#allocation5 + $0xf8] sm:$0xff]  ;;  %v237_v4 = vld [vmem:[#allocation7 + $0xc0] sm:$0xff]  ;;  %v503_v6 = vpack.c.bf16 %v98_v59, %v96_v58 }
  0x47   :  { %492 = vmatpush1.bf16.msra.mxu0 %v491_v28  ;;  %516 = vmatpush3.bf16.msra.mxu1 %v515_v48  ;;  %v238_v5 = vld [vmem:[#allocation7 + $0xc8] sm:$0xff]  ;;  %v100_v7 = vld [vmem:[#allocation5 + $0xe0] sm:$0xff]  ;;  %v523_v8 = vpack.c.bf16 %v220_v2, %v219_v1  ;;  %v505_v9 = vpack.c.bf16 %v103_v3, %v101_v62  ;;  %v102_v10 = vld [vmem:[#allocation5 + $0xf0] sm:$0xff] }
  0x48   :  { %494 = vmatprep.subr.bf16.mxu0 %v493_v34  ;;  %518 = vmatprep.subr.bf16.mxu1 %v517_v51  ;;  %v525_v11 = vpack.c.bf16 %v238_v5, %v237_v4  ;;  %v221_v12 = vld [vmem:[#allocation7 + $0x40] sm:$0xff]  ;;  %v222_v13 = vld [vmem:[#allocation7 + $0x48] sm:$0xff]  ;;  %v239_v14 = vld [vmem:[#allocation7 + $0xd0] sm:$0xff]  ;;  %v507_v16 = vpack.c.bf16 %v102_v10, %v100_v7 }
  0x49   :  { %v240_v15 = vld [vmem:[#allocation7 + $0xd8] sm:$0xff]  ;;  %v527_v17 = vpack.c.bf16 %v222_v13, %v221_v12  ;;  %v223_v19 = vld [vmem:[#allocation7 + $0x50] sm:$0xff]  ;;  %v241_v21 = vld [vmem:[#allocation7 + $0xe0] sm:$0xff] }
  0x4a   :  { %v529_v18 = vpack.c.bf16 %v240_v15, %v239_v14  ;;  %v224_v20 = vld [vmem:[#allocation7 + $0x58] sm:$0xff]  ;;  %v242_v22 = vld [vmem:[#allocation7 + $0xe8] sm:$0xff]  ;;  %v744_v23 = vld [vmem:[#allocation2] sm:$0xff] }
  0x4b   :  { %496 = vmatpush1.bf16.msra.mxu0 %v495_v45  ;;  %520 = vmatpush3.bf16.msra.mxu1 %v519_v60  ;;  %v531_v24 = vpack.c.bf16 %v224_v20, %v223_v19  ;;  %v533_v25 = vpack.c.bf16 %v242_v22, %v241_v21  ;;  %v748_v26 = vld [vmem:[#allocation2 + $0x8] sm:$0xff]  ;;  %v752_v27 = vld [vmem:[#allocation2 + $0x10] sm:$0xff]  ;;  %v756_v28 = vld [vmem:[#allocation2 + $0x18] sm:$0xff] }
  0x4c   :  { %498 = vmatprep.subr.bf16.mxu0 %v497_v49  ;;  %522 = vmatprep.subr.bf16.mxu1 %v521_v63  ;;  %v225_v29 = vld [vmem:[#allocation7 + $0x60] sm:$0xff]  ;;  %v226_v30 = vld [vmem:[#allocation7 + $0x68] sm:$0xff]  ;;  %v243_v32 = vld [vmem:[#allocation7 + $0xf0] sm:$0xff] }
  0x4d   :  { %v535_v31 = vpack.c.bf16 %v226_v30, %v225_v29  ;;  %v244_v33 = vld [vmem:[#allocation7 + $0xf8] sm:$0xff]  ;;  %v227_v35 = vld [vmem:[#allocation7 + $0x70] sm:$0xff] }
  0x4e   :  { %v537_v34 = vpack.c.bf16 %v244_v33, %v243_v32  ;;  %v228_v36 = vld [vmem:[#allocation7 + $0x78] sm:$0xff] }
  0x4f   :  { %500 = vmatpush1.bf16.msra.mxu0 %v499_v57  ;;  %524 = vmatpush3.bf16.msra.mxu1 %v523_v8  ;;  %v539_v37 = vpack.c.bf16 %v228_v36, %v227_v35 }
  0x50   :  { %502 = vmatprep.subr.bf16.mxu0 %v501_v61  ;;  %526 = vmatprep.subr.bf16.mxu1 %v525_v11 }
  0x53   :  { %504 = vmatpush1.bf16.msra.mxu0 %v503_v6  ;;  %528 = vmatpush3.bf16.msra.mxu1 %v527_v17  ;;  %v430_v6 = vld [vmem:[%s794_s4] ss:$0 sm:$0xff] }
  0x54   :  { %506 = vmatprep.subr.bf16.mxu0 %v505_v9  ;;  %530 = vmatprep.subr.bf16.mxu1 %v529_v18 }
  0x57   :  { %508 = vmatpush1.bf16.msra.mxu0 %v507_v16  ;;  %532 = vmatpush3.bf16.msra.mxu1 %v531_v24 }
  0x58   :  { %534 = vmatprep.subr.bf16.mxu1 %v533_v25 }
  0x5a   :  { %181 = vmatmul.mubr.f32.vlgmr.msra.gmra.mrb[0].mxu0 %v744_v23 }
  0x5b   :  { %186 = vmatprep.mubr.f32.mxu0 %v659_v0  ;;  %536 = vmatpush3.bf16.msra.mxu1 %v535_v31 }
  0x5c   :  { %538 = vmatprep.subr.bf16.mxu1 %v537_v34 }
  0x5e   :  { %187 = vmatmul.mubr.f32.gmra.mrb[2].mxu0 %v748_v26 }
  0x5f   :  { %192 = vmatprep.mubr.f32.mxu0 %v659_v0  ;;  %540 = vmatpush3.bf16.msra.mxu1 %v539_v37 }
  0x62   :  { %193 = vmatmul.mubr.f32.gmra.mrb[4].mxu0 %v752_v27 }
  0x63   :  { %198 = vmatprep.mubr.f32.mxu0 %v659_v0  ;;  %v104_v0 = vld [vmem:[%s792_s2] sm:$0x3] }
  0x64   :  { %v109_v42 = vrot.slane %v104_v0, %v108_v40  ;;  %v113_v43 = vrot.slane %v104_v0, %v112_v41 }
  0x66   :  { %199 = vmatmul.mubr.f32.gmra.mrb[6].mxu0 %v756_v28 }
 0x12d   :  { %v182_v44 = vpop.f32.mrb[0].mxu0 }
 0x12e   :  { %v183_v45 = vadd.f32 %v182_v44, %v109_v42  ;;  %v184_v46 = vpop.f32.mrb[1].mxu0 }
 0x12f   :  { %v185_v47 = vadd.f32 %v184_v46, %v113_v43 }
 0x130   :  { %v205_v50 = vmax.f32 %v183_v45, 0.0 }
 0x131   :  { %v188_v48 = vpop.f32.mrb[2].mxu0  ;;  %v206_v49 = vmax.f32 %v185_v47, 0.0 }
 0x132   :  { %v189_v51 = vadd.f32 %v188_v48, %v109_v42  ;;  %v190_v52 = vpop.f32.mrb[3].mxu0 }
 0x133   :  { %v191_v53 = vadd.f32 %v190_v52, %v113_v43  ;;  %316 = vmatprep.mubr.f32.mxu1 %v206_v49 }
 0x134   :  { %317 = vmatmul.mubr.f32.vlgmr.msra.gmra.mrb[0].mxu1 %v205_v50  ;;  %v207_v56 = vmax.f32 %v189_v51, 0.0 }
 0x135   :  { %v208_v54 = vmax.f32 %v191_v53, 0.0  ;;  %v194_v55 = vpop.f32.mrb[4].mxu0 }
 0x136   :  { %v195_v57 = vadd.f32 %v194_v55, %v109_v42  ;;  %v196_v58 = vpop.f32.mrb[5].mxu0 }
 0x137   :  { %v197_v59 = vadd.f32 %v196_v58, %v113_v43  ;;  %321 = vmatprep.mubr.f32.mxu1 %v208_v54  ;;  %v431_v54 = vld [vmem:[%s795_s5] ss:$0 sm:$0xff]  ;;  %s660_s5 = smov [#allocation8]  }
 0x138   :  { %322 = vmatmul.mubr.f32.gmra.mrb[2].mxu1 %v207_v56  ;;  %v209_v62 = vmax.f32 %v195_v57, 0.0  ;;  %v432_v56 = vld [vmem:[%s796_s6] ss:$0 sm:$0xff]  ;;  %s417_s21 = sshll.u32 %s660_s5, 4  ;;  %s418_s21 = int_to_ptr.vmem [resolvable:$true] %s417_s21 }
 0x139   :  { %v210_v60 = vmax.f32 %v197_v59, 0.0  ;;  %v200_v61 = vpop.f32.mrb[6].mxu0  ;;  %s624_s6 = scalar_lea.vmem %s418_s21, 512  ;;  %p629_p11 = scmp.lt.s32.totalorder %s418_s21, %s418_s21 }
 0x13a   :  { %v201_v63 = vadd.f32 %v200_v61, %v109_v42  ;;  %v202_v1 = vpop.f32.mrb[7].mxu0  ;;  %p625_p10 = scmp.ne.s32.totalorder %s418_s21, %s624_s6  ;;  %p630_p12 = scmp.lt.s32.totalorder %s624_s6, %s624_s6 }
 0x13b   :  { %v203_v2 = vadd.f32 %v202_v1, %v113_v43  ;;  %326 = vmatprep.mubr.f32.mxu1 %v210_v60 }
 0x13c   :  { %327 = vmatmul.mubr.f32.gmra.mrb[4].mxu1 %v209_v62  ;;  %v211_v4 = vmax.f32 %v201_v63, 0.0  ;;  %p631_p13 = por %p630_p12, %p629_p11 }
 0x13d   :  { %v212_v3 = vmax.f32 %v203_v2, 0.0 }
 0x13e   :  { %p632_p0 = pnand %p631_p13, %p625_p10 }
 0x13f   :  { %331 = vmatprep.mubr.f32.mxu1 %v212_v3 }
 0x140   :  { %332 = vmatmul.mubr.f32.gmra.mrb[6].mxu1 %v211_v4 }
 0x207   :  { %v465_v5 = vpop.f32.mrb[0].mxu1 }
 0x208   :  { %v466_v7 = vpop.f32.mrb[1].mxu1 }
 0x209   :  { %v467_v8 = vadd.f32 %v466_v7, %v465_v5 }
 0x20b   :  { %v319_v9 = vadd.f32 %v467_v8, %v430_v6  ;;  %v468_v10 = vpop.f32.mrb[2].mxu1 }
 0x20c   :  { %v469_v11 = vpop.f32.mrb[3].mxu1 }
 0x20d   :  { %v470_v12 = vadd.f32 %v469_v11, %v468_v10  ;;  %v337_v13 = vadd.f32 %v319_v9, %v744_v23 }
 0x20f   :  { %v324_v14 = vadd.f32 %v470_v12, %v430_v6  ;;  %v471_v15 = vpop.f32.mrb[4].mxu1  ;;  %341 = vadd.xlane.f32.xlu0 %v337_v13 }
 0x210   :  { %v472_v16 = vpop.f32.mrb[5].mxu1 }
 0x211   :  { %v473_v17 = vadd.f32 %v472_v16, %v471_v15  ;;  %v338_v18 = vadd.f32 %v324_v14, %v748_v26 }
 0x213   :  { %v329_v19 = vadd.f32 %v473_v17, %v430_v6  ;;  %v474_v20 = vpop.f32.mrb[6].mxu1  ;;  %343 = vadd.xlane.f32.xlu0 %v338_v18 }
 0x214   :  { %v475_v21 = vpop.f32.mrb[7].mxu1 }
 0x215   :  { %v476_v22 = vadd.f32 %v475_v21, %v474_v20  ;;  %v339_v24 = vadd.f32 %v329_v19, %v752_v27 }
 0x217   :  { %v334_v25 = vadd.f32 %v476_v22, %v430_v6  ;;  %345 = vadd.xlane.f32.xlu1 %v339_v24 }
 0x219   :  { %v340_v29 = vadd.f32 %v334_v25, %v756_v28 }
 0x21b   :  { %347 = vadd.xlane.f32.xlu1 %v340_v29 }
 0x29c   :  { %v342_v23 = vpop.xlane.xlu0 %341 }
 0x29d   :  { %v350_v30 = vmul.f32 0.0078125, %v342_v23 }
 0x29f   :  { %v354_v31 = vsub.f32 %v337_v13, %v350_v30 }
 0x2a0   :  { %v344_v32 = vpop.xlane.xlu0 %343 }
 0x2a1   :  { %v351_v33 = vmul.f32 0.0078125, %v344_v32  ;;  %v358_v34 = vmul.f32 %v354_v31, %v354_v31 }
 0x2a3   :  { %v355_v35 = vsub.f32 %v338_v18, %v351_v33  ;;  %362 = vadd.xlane.f32.xlu0 %v358_v34 }
 0x2a4   :  { %v346_v26 = vpop.xlane.xlu1 %345 }
 0x2a5   :  { %v352_v36 = vmul.f32 0.0078125, %v346_v26  ;;  %v359_v37 = vmul.f32 %v355_v35, %v355_v35 }
 0x2a7   :  { %v356_v38 = vsub.f32 %v339_v24, %v352_v36  ;;  %364 = vadd.xlane.f32.xlu1 %v359_v37 }
 0x2a8   :  { %v348_v39 = vpop.xlane.xlu1 %347 }
 0x2a9   :  { %v353_v27 = vmul.f32 0.0078125, %v348_v39  ;;  %v360_v40 = vmul.f32 %v356_v38, %v356_v38 }
 0x2ab   :  { %v357_v0 = vsub.f32 %v340_v29, %v353_v27  ;;  %366 = vadd.xlane.f32.xlu0 %v360_v40 }
 0x2ad   :  { %v361_v28 = vmul.f32 %v357_v0, %v357_v0 }
 0x2af   :  { %368 = vadd.xlane.f32.xlu1 %v361_v28 }
 0x330   :  { %v363_v41 = vpop.xlane.xlu0 %362 }
 0x331   :  { %v370_v42 = vmul.f32 0.0078125, %v363_v41 }
 0x333   :  { %v374_v43 = vadd.f32 1e-05, %v370_v42 }
 0x334   :  { %v365_v44 = vpop.xlane.xlu1 %364 }
 0x335   :  { %550 = vrsqrt.f32 %v374_v43  ;;  %v371_v45 = vmul.f32 0.0078125, %v365_v44 }
 0x337   :  { %v375_v46 = vadd.f32 1e-05, %v371_v45 }
 0x338   :  { %v367_v47 = vpop.xlane.xlu0 %366 }
 0x339   :  { %552 = vrsqrt.f32 %v375_v46  ;;  %v372_v48 = vmul.f32 0.0078125, %v367_v47 }
 0x33b   :  { %v376_v49 = vadd.f32 1e-05, %v372_v48 }
 0x33c   :  { %v369_v50 = vpop.xlane.xlu1 %368 }
 0x33d   :  { %554 = vrsqrt.f32 %v376_v49  ;;  %v373_v51 = vmul.f32 0.0078125, %v369_v50 }
 0x33f   :  { %v551_v52 = vpop.eup %550  ;;  %v377_v53 = vadd.f32 1e-05, %v373_v51 }
 0x340   :  { %v382_v55 = vmul.f32 %v551_v52, %v354_v31 }
 0x341   :  { %556 = vrsqrt.f32 %v377_v53 }
 0x342   :  { %v393_v57 = vmul.f32 %v431_v54, %v382_v55 }
 0x343   :  { %v553_v58 = vpop.eup %552 }
 0x344   :  { %v383_v59 = vmul.f32 %v553_v58, %v355_v35  ;;  %v404_v60 = vadd.f32 %v432_v56, %v393_v57 }
 0x346   :  { %v394_v61 = vmul.f32 %v431_v54, %v383_v59  ;;  %408 = vst [vmem:[#allocation8] sm:$0xff] %v404_v60 }
 0x347   :  { %v555_v62 = vpop.eup %554 }
 0x348   :  { %v384_v63 = vmul.f32 %v555_v62, %v356_v38  ;;  %v405_v1 = vadd.f32 %v432_v56, %v394_v61 }
 0x34a   :  { %v395_v2 = vmul.f32 %v431_v54, %v384_v63  ;;  %409 = vst [vmem:[#allocation8 + $0x8] sm:$0xff] %v405_v1 }
 0x34b   :  { %v557_v3 = vpop.eup %556 }
 0x34c   :  { %v385_v4 = vmul.f32 %v557_v3, %v357_v0  ;;  %v406_v5 = vadd.f32 %v432_v56, %v395_v2 }
 0x34e   :  { %v396_v6 = vmul.f32 %v431_v54, %v385_v4  ;;  %410 = vst [vmem:[#allocation8 + $0x10] sm:$0xff] %v406_v5 }
 0x350   :  { %v407_v7 = vadd.f32 %v432_v56, %v396_v6 }
 0x352   :  { %411 = vst [vmem:[#allocation8 + $0x18] sm:$0xff] %v407_v7 }
 0x353   :  { %635 = shalt.err (!%p632_p0)
}
 0x354   :  { %s636_s24 = scalar_lea.hbm %s797_s7, 512 }
 0x355   :  { %p637_p1 = scmp.ne.s32.totalorder %s797_s7, %s636_s24  ;;  %p640_p2 = scmp.lt.u32.totalorder %s636_s24, %s797_s7 }
 0x357   :  { %p642_p3 = pnand %p640_p2, %p637_p1 }
 0x359   :  { %645 = shalt.err (!%p642_p3)
}
 0x35a   :  { %423 = dma.vmem_to_hbm [thread:$0]  %s418_s21, 512, %s797_s7, [#allocation4], %s656_s1, %s656_s1, %s657_s25  }
 0x35b   :  { %650 = dma.done.wait [#allocation4], 512  }
 0x35c   :  { %651 = vsyncadd [#allocation4], 4294966784 }
 0x35d   :  { %427 = vsyncpa [#allocation3], 1 }
 0x35e   :  { %428 = vsyncpa [#allocation6], 1 }
 0x35f   :  { %429 = vsyncpa [#allocation4], 1 }

</bundles_post_ra>
